<compile_context>
chip_gen: v5e
topology: v5e:2x2
jax: 0.10.0
libtpu: 0.0.40
codegen_flags: <defaults>
</compile_context>

<pallas_src>
import functools

import jax
import jax.numpy as jnp
from jax.experimental import pallas as pl
from jax.experimental.pallas import tpu as pltpu

_MiB = 1024 * 1024


def _vmem_capacity_bytes(default_bytes=64 * _MiB):
    """Physical VMEM per TensorCore; conservative (v7x-sized) default."""
    try:
        info = pltpu.get_tpu_info()
        cap = getattr(info, "vmem_capacity_bytes", None)
        if cap:
            return int(cap)
    except Exception:
        pass
    return default_bytes


def _se_fused_kernel(x_ref, w1_ref, b1_ref, w2_ref, b2_ref, o_ref, *, inv_t):
    # squeeze: time-mean straight off the ref, accumulated in float32 (safe for
    # bf16 inputs / large T).  Only the (bt, H) reduction stays live across the
    # MLP; the (bt, T, H) tile is streamed load->add here and streamed again
    # load->mul->store below, so vreg pressure stays bounded for large tiles.
    y = jnp.sum(x_ref[...], axis=1, dtype=jnp.float32) * inv_t          # (bt, H)

    # excitation: Linear -> ReLU -> Linear -> Sigmoid, f32 accumulation on MXU.
    h = jnp.dot(y, w1_ref[...].astype(jnp.float32),
                preferred_element_type=jnp.float32) + b1_ref[...]       # (bt, S)
    h = jnp.maximum(h, 0.0)
    g = jnp.dot(h, w2_ref[...].astype(jnp.float32),
                preferred_element_type=jnp.float32) + b2_ref[...]       # (bt, H)
    g = jax.nn.sigmoid(g).astype(o_ref.dtype)

    # scale: re-read x from VMEM and broadcast the gate over time.
    o_ref[...] = (x_ref[...] * g[:, None, :]).astype(o_ref.dtype)


def _se_scale_kernel(mean_ref, w1_ref, b1_ref, w2_ref, b2_ref, x_ref, o_ref):
    # Fallback (long-sequence) path: gate recomputed per (batch, time-tile)
    # block from the precomputed mean — negligible FLOPs, avoids a separate
    # gate array round-trip through HBM.
    y = mean_ref[...].astype(jnp.float32)                               # (1, H)
    h = jnp.maximum(
        jnp.dot(y, w1_ref[...].astype(jnp.float32),
                preferred_element_type=jnp.float32) + b1_ref[...], 0.0)
    g = jnp.dot(h, w2_ref[...].astype(jnp.float32),
                preferred_element_type=jnp.float32) + b2_ref[...]
    g = jax.nn.sigmoid(g).astype(o_ref.dtype)
    o_ref[...] = (x_ref[...] * g[:, None, :]).astype(o_ref.dtype)


def _se_fused(x, w1, b1r, w2, b2r, slab_budget, vmem_cap, weight_bytes,
              donate_x):
    B, T, H = x.shape
    S = w1.shape[1]
    itemsize = jnp.dtype(x.dtype).itemsize
    row_bytes = T * H * itemsize

    # Batch tile: as many rows as fit the slab budget...
    bt = min(B, max(1, slab_budget // row_bytes))
    if B >= 2:
        bt = min(bt, pl.cdiv(B, 2))      # >= 2 grid steps => both v7x TCs used
    n_steps = pl.cdiv(B, bt)
    bt = pl.cdiv(B, n_steps)             # rebalance steps, minimize padding
    if bt > 8 and (pl.cdiv(bt, 8) * 8) * row_bytes <= slab_budget:
        bt = pl.cdiv(bt, 8) * 8          # sublane-align the MXU M dimension
    b_pad = pl.cdiv(B, bt) * bt

    if b_pad != B:
        # Padded rows are zero: their (finite) gate multiplies zeros and the
        # rows are sliced away below.  Keep this zero-padding invariant.
        x_in = jnp.pad(x, ((0, b_pad - B), (0, 0), (0, 0)))
    else:
        x_in = x

    slab_bytes = bt * row_bytes          # one x tile; out tile is the same size
    vmem_limit = min(
        vmem_cap,
        max(16 * _MiB, 4 * slab_bytes + 2 * weight_bytes + 8 * _MiB))

    flops = 3 * b_pad * T * H + 4 * b_pad * H * S   # reduce + scale + 2 matmuls
    bytes_accessed = 2 * b_pad * T * H * itemsize + weight_bytes

    kernel = functools.partial(_se_fused_kernel, inv_t=1.0 / T)
    aliases = {0: 0} if (donate_x and b_pad == B) else {}

    out = pl.pallas_call(
        kernel,
        out_shape=jax.ShapeDtypeStruct((b_pad, T, H), x.dtype),
        grid_spec=pltpu.PrefetchScalarGridSpec(
            num_scalar_prefetch=0,
            grid=(b_pad // bt,),
            in_specs=[
                pl.BlockSpec((bt, T, H), lambda b: (b, 0, 0)),
                pl.BlockSpec((H, S), lambda b: (0, 0)),
                pl.BlockSpec((1, S), lambda b: (0, 0)),
                pl.BlockSpec((S, H), lambda b: (0, 0)),
                pl.BlockSpec((1, H), lambda b: (0, 0)),
            ],
            out_specs=pl.BlockSpec((bt, T, H), lambda b: (b, 0, 0)),
        ),
        compiler_params=pltpu.CompilerParams(
            dimension_semantics=("parallel",),
            vmem_limit_bytes=vmem_limit),
        cost_estimate=pl.CostEstimate(
            flops=flops,
            transcendentals=b_pad * H,
            bytes_accessed=bytes_accessed),
        input_output_aliases=aliases,
    )(x_in, w1, b1r, w2, b2r)

    return out[:B] if b_pad != B else out


def _se_time_tiled(x, w1, b1r, w2, b2r, slab_budget, vmem_cap, weight_bytes,
                   donate_x):
    """Fallback when a single (1, T, H) row does not fit the VMEM slab budget."""
    B, T, H = x.shape
    S = w1.shape[1]
    itemsize = jnp.dtype(x.dtype).itemsize

    # Squeeze (time mean) in plain XLA at HBM roofline, f32 accumulation; the
    # excitation gate is recomputed per tile inside the scale kernel.
    mean = jnp.mean(x, axis=1, dtype=jnp.float32)                     # (B, H)

    tt = max(8, ((slab_budget // (H * itemsize)) // 8) * 8)
    tt = min(tt, T)
    n_t = pl.cdiv(T, tt)   # ragged last tile handled by Pallas edge masking

    slab_bytes = tt * H * itemsize
    vmem_limit = min(
        vmem_cap,
        max(16 * _MiB, 4 * slab_bytes + 2 * weight_bytes + 8 * _MiB))

    flops = B * T * H + 4 * B * n_t * H * S
    bytes_accessed = 2 * B * T * H * itemsize + B * H * 4 + weight_bytes
    aliases = {5: 0} if donate_x else {}

    return pl.pallas_call(
        _se_scale_kernel,
        out_shape=jax.ShapeDtypeStruct((B, T, H), x.dtype),
        grid_spec=pltpu.PrefetchScalarGridSpec(
            num_scalar_prefetch=0,
            grid=(B, n_t),
            in_specs=[
                pl.BlockSpec((1, H), lambda b, t: (b, 0)),
                pl.BlockSpec((H, S), lambda b, t: (0, 0)),
                pl.BlockSpec((1, S), lambda b, t: (0, 0)),
                pl.BlockSpec((S, H), lambda b, t: (0, 0)),
                pl.BlockSpec((1, H), lambda b, t: (0, 0)),
                pl.BlockSpec((1, tt, H), lambda b, t: (b, t, 0)),
            ],
            out_specs=pl.BlockSpec((1, tt, H), lambda b, t: (b, t, 0)),
        ),
        compiler_params=pltpu.CompilerParams(
            dimension_semantics=("parallel", "parallel"),
            vmem_limit_bytes=vmem_limit),
        cost_estimate=pl.CostEstimate(
            flops=flops,
            transcendentals=B * n_t * H,
            bytes_accessed=bytes_accessed),
        input_output_aliases=aliases,
    )(mean, w1, b1r, w2, b2r, x)


def squeeze_excitation_block(x, w1, b1, w2, b2, *, donate_x=False):
    """x: (B, T, H).  w1: (H, S), b1: (S,), w2: (S, H), b2: (H,)."""
    B, T, H = x.shape
    S = w1.shape[1]
    itemsize = jnp.dtype(x.dtype).itemsize
    w_isz = jnp.dtype(w1.dtype).itemsize
    b_isz = jnp.dtype(b1.dtype).itemsize

    b1r = b1.reshape(1, S)
    b2r = b2.reshape(1, H)
    weight_bytes = (H * S + S * H) * w_isz + (S + H) * b_isz

    # Per-generation capacity: pipelined footprint is about 2 (double-buffer)
    # x 2 (in + out) x slab, so slab = capacity / 8 stays near half of VMEM
    # with headroom for weights and compiler scratch on every generation.
    vmem_cap = _vmem_capacity_bytes()
    slab_budget = vmem_cap // 8

    row_bytes = T * H * itemsize
    if row_bytes <= slab_budget:
        return _se_fused(x, w1, b1r, w2, b2r, slab_budget, vmem_cap,
                         weight_bytes, donate_x)
    return _se_time_tiled(x, w1, b1r, w2, b2r, slab_budget, vmem_cap,
                          weight_bytes, donate_x)


def squeeze_excitation_ref(x, w1, b1, w2, b2):
    y = x.mean(axis=1, keepdims=True)                       # (B, 1, H)
    y = jnp.maximum(y @ w1 + b1, 0.0)                       # (B, 1, S)
    y = jax.nn.sigmoid(y @ w2 + b2)                         # (B, 1, H)
    return x * y


if __name__ == "__main__":
    B, T, H, S = 2, 8, 32, 16

    key = jax.random.PRNGKey(0)
    kx, k1, k2, k3, k4 = jax.random.split(key, 5)

    x = jax.random.normal(kx, (B, T, H), dtype=jnp.float32)
    # deterministic synthetic parameters (nn.Linear shapes, transposed to (in, out))
    w1 = jax.random.normal(k1, (H, S), dtype=jnp.float32) * 0.1
    b1 = jax.random.normal(k2, (S,), dtype=jnp.float32) * 0.1
    w2 = jax.random.normal(k3, (S, H), dtype=jnp.float32) * 0.1
    b2 = jax.random.normal(k4, (H,), dtype=jnp.float32) * 0.1

    out = squeeze_excitation_block(x, w1, b1, w2, b2)
    out = jax.block_until_ready(out)

    ref = squeeze_excitation_ref(x, w1, b1, w2, b2)
    assert out.shape == (B, T, H)
    assert jnp.allclose(out, ref, atol=1e-5, rtol=1e-5), "mismatch vs reference"

    print("KERNEL_OK")
</pallas_src>

<mosaic_0001>
module attributes {stable_mosaic.version = 11 : i64} {
  func.func @_se_fused_kernel(%arg0: i32, %arg1: memref<1x8x32xf32, #tpu.memory_space<vmem>>, %arg2: memref<32x16xf32, #tpu.memory_space<vmem>>, %arg3: memref<1x16xf32, #tpu.memory_space<vmem>>, %arg4: memref<16x32xf32, #tpu.memory_space<vmem>>, %arg5: memref<1x32xf32, #tpu.memory_space<vmem>>, %arg6: memref<1x8x32xf32, #tpu.memory_space<vmem>>) attributes {dimension_semantics = [#tpu.dimension_semantics<parallel>], iteration_bounds = array<i64: 2>, scalar_prefetch = 0 : i64, scratch_operands = 0 : i64, tpu.core_type = #tpu.core_type<tc>, window_params = [{transform_indices = @transform_0, window_bounds = array<i64: 1, 8, 32>}, {pipeline_mode = #tpu.pipeline_mode<synchronous>, transform_indices = @transform_1, window_bounds = array<i64: 32, 16>}, {pipeline_mode = #tpu.pipeline_mode<synchronous>, transform_indices = @transform_2, window_bounds = array<i64: 1, 16>}, {pipeline_mode = #tpu.pipeline_mode<synchronous>, transform_indices = @transform_3, window_bounds = array<i64: 16, 32>}, {pipeline_mode = #tpu.pipeline_mode<synchronous>, transform_indices = @transform_4, window_bounds = array<i64: 1, 32>}, {transform_indices = @transform_5, window_bounds = array<i64: 1, 8, 32>}]} {
    %c0 = arith.constant 0 : index
    %c0_0 = arith.constant 0 : index
    %c0_1 = arith.constant 0 : index
    %0 = vector.load %arg1[%c0, %c0_0, %c0_1] : memref<1x8x32xf32, #tpu.memory_space<vmem>>, vector<1x8x32xf32>
    %cst = arith.constant dense<0.000000e+00> : vector<1x32xf32>
    %1 = vector.multi_reduction <add>, %0, %cst [1] : vector<1x8x32xf32> to vector<1x32xf32>
    %cst_2 = arith.constant 1.250000e-01 : f32
    %2 = vector.broadcast %cst_2 : f32 to vector<1x32xf32>
    %3 = arith.mulf %1, %2 : vector<1x32xf32>
    %c0_3 = arith.constant 0 : index
    %c0_4 = arith.constant 0 : index
    %4 = vector.load %arg2[%c0_3, %c0_4] : memref<32x16xf32, #tpu.memory_space<vmem>>, vector<32x16xf32>
    %cst_5 = arith.constant dense<0.000000e+00> : vector<1x16xf32>
    %5 = tpu.matmul %3, %4, %cst_5 {dimension_numbers = #tpu.dot_dimension_numbers<[1], [0], [0], [1], [0, 0, 1, 1], [], []>} : vector<1x32xf32>, vector<32x16xf32>, vector<1x16xf32> -> vector<1x16xf32>
    %c0_6 = arith.constant 0 : index
    %c0_7 = arith.constant 0 : index
    %6 = vector.load %arg3[%c0_6, %c0_7] : memref<1x16xf32, #tpu.memory_space<vmem>>, vector<1x16xf32>
    %7 = arith.addf %5, %6 : vector<1x16xf32>
    %cst_8 = arith.constant 0.000000e+00 : f32
    %8 = vector.broadcast %cst_8 : f32 to vector<1x16xf32>
    %9 = arith.maximumf %7, %8 : vector<1x16xf32>
    %c0_9 = arith.constant 0 : index
    %c0_10 = arith.constant 0 : index
    %10 = vector.load %arg4[%c0_9, %c0_10] : memref<16x32xf32, #tpu.memory_space<vmem>>, vector<16x32xf32>
    %cst_11 = arith.constant dense<0.000000e+00> : vector<1x32xf32>
    %11 = tpu.matmul %9, %10, %cst_11 {dimension_numbers = #tpu.dot_dimension_numbers<[1], [0], [0], [1], [0, 0, 1, 1], [], []>} : vector<1x16xf32>, vector<16x32xf32>, vector<1x32xf32> -> vector<1x32xf32>
    %c0_12 = arith.constant 0 : index
    %c0_13 = arith.constant 0 : index
    %12 = vector.load %arg5[%c0_12, %c0_13] : memref<1x32xf32, #tpu.memory_space<vmem>>, vector<1x32xf32>
    %13 = arith.addf %11, %12 : vector<1x32xf32>
    %14 = arith.negf %13 : vector<1x32xf32>
    %15 = math.exp %14 : vector<1x32xf32>
    %cst_14 = arith.constant 1.000000e+00 : f32
    %16 = vector.broadcast %cst_14 : f32 to vector<1x32xf32>
    %17 = arith.addf %16, %15 : vector<1x32xf32>
    %18 = arith.divf %16, %17 : vector<1x32xf32>
    %c0_15 = arith.constant 0 : index
    %c0_16 = arith.constant 0 : index
    %c0_17 = arith.constant 0 : index
    %19 = vector.load %arg1[%c0_15, %c0_16, %c0_17] : memref<1x8x32xf32, #tpu.memory_space<vmem>>, vector<1x8x32xf32>
    %20 = vector.shape_cast %18 : vector<1x32xf32> to vector<1x1x32xf32>
    %21 = vector.broadcast %20 : vector<1x1x32xf32> to vector<1x8x32xf32>
    %22 = arith.mulf %19, %21 : vector<1x8x32xf32>
    %c0_18 = arith.constant 0 : index
    %c0_19 = arith.constant 0 : index
    %c0_20 = arith.constant 0 : index
    %23 = vector.load %arg6[%c0_18, %c0_19, %c0_20] : memref<1x8x32xf32, #tpu.memory_space<vmem>>, vector<1x8x32xf32>
    tpu.vector_store %arg6[%c0_18, %c0_19, %c0_20], %22 {strides = array<i32>} : memref<1x8x32xf32, #tpu.memory_space<vmem>>, vector<1x8x32xf32>,
    return
  }
  func.func @transform_0(%arg0: i32) -> (i32, i32, i32) {
    %c0_i32 = arith.constant 0 : i32
    %c0_i32_0 = arith.constant 0 : i32
    %c0_i32_1 = arith.constant 0 : i32
    return %arg0, %c0_i32, %c0_i32_0 : i32, i32, i32
  }
  func.func @transform_1(%arg0: i32) -> (i32, i32) {
    %c0_i32 = arith.constant 0 : i32
    %c0_i32_0 = arith.constant 0 : i32
    %c0_i32_1 = arith.constant 0 : i32
    return %c0_i32, %c0_i32_0 : i32, i32
  }
  func.func @transform_2(%arg0: i32) -> (i32, i32) {
    %c0_i32 = arith.constant 0 : i32
    %c0_i32_0 = arith.constant 0 : i32
    %c0_i32_1 = arith.constant 0 : i32
    return %c0_i32, %c0_i32_0 : i32, i32
  }
  func.func @transform_3(%arg0: i32) -> (i32, i32) {
    %c0_i32 = arith.constant 0 : i32
    %c0_i32_0 = arith.constant 0 : i32
    %c0_i32_1 = arith.constant 0 : i32
    return %c0_i32, %c0_i32_0 : i32, i32
  }
  func.func @transform_4(%arg0: i32) -> (i32, i32) {
    %c0_i32 = arith.constant 0 : i32
    %c0_i32_0 = arith.constant 0 : i32
    %c0_i32_1 = arith.constant 0 : i32
    return %c0_i32, %c0_i32_0 : i32, i32
  }
  func.func @transform_5(%arg0: i32) -> (i32, i32, i32) {
    %c0_i32 = arith.constant 0 : i32
    %c0_i32_0 = arith.constant 0 : i32
    %c0_i32_1 = arith.constant 0 : i32
    return %arg0, %c0_i32, %c0_i32_0 : i32, i32, i32
  }
}

</mosaic_0001>

<bundles_post_ra>
// kernel: tpu_custom_call.1
= control target key start
LH: loop header
LB: loop body
LE: loop exit
PB: predicated region body
PF: predicated region fallthrough
CT: control target
= control target key end

     0   :  { %10 = vsyncpa [#allocation3], 0  ;;  %s645_s0 = inlined_call_operand.vmem [shape: f32[2,8,32], index: 0, kind: input, shape index: {}]   ;;  %s646_s1 = inlined_call_operand.vmem [shape: f32[32,16], index: 1, kind: input, shape index: {}]   ;;  %s647_s2 = inlined_call_operand.vmem [shape: f32[1,16], index: 2, kind: input, shape index: {}]   ;;  %s648_s3 = inlined_call_operand.vmem [shape: f32[16,32], index: 3, kind: input, shape index: {}]   ;;  %s649_s4 = inlined_call_operand.vmem [shape: f32[1,32], index: 4, kind: input, shape index: {}]   ;;  %s650_s5 = inlined_call_operand.hbm [shape: f32[2,8,32], index: 5, kind: output, shape index: {}]  }
   0x1   :  { %12 = vsyncpa [#allocation3 + $0x1], 0  ;;  %s533_s18 = smov 0   ;;  %s535_s19 = smov 0  }
   0x2   :  { %s537_s20 = smov 0   ;;  %s539_s21 = smov 0  }
   0x3 LB: > { %s554_s22 = sadd.s32 4294967295, %s501_s21   ;;  %s383_s23 = sadd.s32 4294967294, %s501_s21   ;;  %s501_s21 = sphi %s539_s21, %s656_s21   ;;  %s497_s20 = sphi %s537_s20, %s655_s20   ;;  %s493_s19 = sphi %s535_s19, %s654_s19   ;;  %s489_s18 = sphi %s533_s18, %s653_s18  }
   0x4   : > { %s558_s24 = sadd.s32 1, %s501_s21   ;;  %s135_s25 = sadd.s32 1, %s497_s20 }
   0x5   : > { %s132_s26 = ssub.s32 %s501_s21, %s558_s24  ;;  %p145_p0 = scmp.ne.s32.totalorder %s497_s20, %s493_s19 }
   0x6   : > { %p133_p1 = scmp.eq.s32.totalorder %s132_s26, 0  ;;  %p146_p2 = scmp.eq.s32.totalorder %s554_s22, 1 }
   0x7   : > { %p151_p3 = scmp.ne.s32.totalorder %s493_s19, %s489_s18  ;;  %p152_p4 = scmp.eq.s32.totalorder %s383_s23, 1 }
   0x8   : > { %s569_s27 = scalar_select %p133_p1, %s497_s20, %s135_s25  }
   0x9   : > { %p571_p5 = por %p146_p2, %p145_p0  ;;  %p575_p6 = por %p152_p4, %p151_p3 }
   0xa   : > { %p386_p7 = scmp.ge.s32.totalorder %s501_s21, 1  ;;  %p189_p8 = scmp.lt.s32.totalorder %s501_s21, 3 }
   0xc   : > { %p190_p9 = pnand %p386_p7, %p189_p8 }
   0xd   : > { %p216_p10 = scmp.lt.s32.totalorder (!%p190_p9), %s554_s22, 1  ;;  %s213_s10 = sand.u32 (!%p190_p9), 1, %s493_s19  }
   0xe   : > { %193 = sbr.rel (%p190_p9) target bundleno = 332 (0x14c), region = 40  ;;  %s393_s12 = sshll.u32 (!%p190_p9), %s554_s22, 3 }
   0xf   : > { %s319_s15 = scalar_lea.hbm (!%p190_p9), %s650_s5, %s393_s12  ;;  %s459_s7 = scalar_lea.hbm (!%p190_p9), %s650_s5, 16 }
  0x10   : > { %s323_s23 = sshll.u32 (!%p190_p9), %s319_s15, 4  ;;  %s324_s23 = int_to_ptr.hbm [resolvable:$true] %s323_s23 }
  0x11   : > { %s453_s25 = sshra.s32 (!%p190_p9), %s324_s23, 4  ;;  %s454_s25 = int_to_ptr.hbm [resolvable:$true] %s453_s25 }
  0x12   : > { %s455_s26 = scalar_lea.hbm (!%p190_p9), %s454_s25, 8  ;;  %p460_p0 = scmp.lt.s32.totalorder (!%p190_p9), %s454_s25, %s650_s5 }
  0x13   : > { %v233_v0 = vld [vmem:[%s646_s1 + $0x18] sm:$0xff]  ;;  %v232_v1 = vld [vmem:[%s646_s1 + $0x10] sm:$0xff]  ;;  %v231_v2 = vld [vmem:[%s646_s1 + $0x8] sm:$0xff]  ;;  %s217_s11 = scalar_select %p216_p10, %s554_s22, 1  ;;  %vm221_vm0 = vcmask 261120   ;;  %vm262_vm1 = vcmask 130048  }
  0x14   : > { %250 = vmatpush.msra.mxu0 %v233_v0  ;;  %v230_v3 = vld [vmem:[%s646_s1] sm:$0xff]  ;;  %v260_v13 = vld [vmem:[%s648_s3 + $0x8] sm:$0xff]  ;;  %s309_s22 = scalar_lea.sflag [#allocation3], %s213_s10  ;;  %p456_p11 = scmp.ne.s32.totalorder %s454_s25, %s455_s26 }
  0x15   : > { %s388_s14 = sshll.u32 %s217_s11, 3  ;;  %280 = vmatpush.msra.mxu1 %v260_v13  ;;  %v259_v14 = vld [vmem:[%s648_s3] sm:$0xff]  ;;  %s387_s11 = sshll.u32 %s213_s10, 3 }
  0x16   : > { %251 = vmatpush.msra.mxu0 %v232_v1  ;;  %s219_s17 = scalar_lea.vmem %s645_s0, %s388_s14  ;;  %v234_v15 = vld [vmem:[%s647_s2] sm:$0x1]  ;;  %s215_s16 = scalar_lea.vmem [#allocation2], %s387_s11 }
  0x17   : > { %v220_v4 = vld [vmem:[%s219_s17] sm:$0xff]  ;;  %281 = vmatpush.msra.mxu1 %v259_v14  ;;  %s321_s17 = sshll.u32 %s215_s16, 4  ;;  %p457_p12 = pnand %p456_p11, %p571_p5  ;;  %s322_s17 = int_to_ptr.vmem [resolvable:$true] %s321_s17 }
  0x18   : > { %252 = vmatpush.msra.mxu0 %v231_v2  ;;  %v222_v5 = vsel %vm221_vm0, %v220_v4, 0.0  ;;  %v261_v19 = vld [vmem:[%s649_s4] sm:$0x1]  ;;  %p461_p1 = scmp.lt.s32.totalorder %s459_s7, %s455_s26 }
  0x19   : > { %v223_v6 = vrot.slane %v222_v5, 4  ;;  %p458_p13 = pneg %p457_p12 }
  0x1a   : > { %253 = vmatpush.msra.mxu0 %v230_v3  ;;  %p462_p2 = por %p461_p1, %p460_p0 }
  0x1b   : > { %v224_v7 = vadd.f32 %v223_v6, %v222_v5 }
  0x1c   : > { %p463_p3 = pnand %p462_p2, %p458_p13 }
  0x1d   : > { %v225_v8 = vrot.slane %v224_v7, 2 }
  0x1f   : > { %v226_v9 = vadd.f32 %v225_v8, %v224_v7 }
  0x21   : > { %v227_v10 = vrot.slane %v226_v9, 1 }
  0x23   : > { %v228_v11 = vadd.f32 %v227_v10, %v226_v9 }
  0x25   : > { %v229_v12 = vmul.f32 0.125, %v228_v11 }
  0x27   : > { %389 = vmatmul.msk.f32.vlgmr.msra.gmra.mxu0 %vm221_vm0, %v229_v12 }
  0xa4   : > { %v255_v16 = vpop.f32.mrf.mxu0 }
  0xa5   : > { %v256_v17 = vadd.f32 %v255_v16, %v234_v15 }
  0xa7   : > { %v258_v18 = vmax.f32 %v256_v17, 0.0 }
  0xa9   : > { %390 = vmatmul.msk.f32.vlgmr.msra.gmra.mxu1 %vm262_vm1, %v258_v18 }
 0x126   : > { %v283_v20 = vpop.f32.mrf.mxu1 }
 0x127   : > { %v284_v21 = vadd.f32 %v283_v20, %v261_v19 }
 0x129   : > { %v391_v22 = vmul.f32 -1.442695, %v284_v21 }
 0x12b   : > { %435 = vpow2.f32 %v391_v22 }
 0x131   : > { %v436_v23 = vpop.eup %435 }
 0x132   : > { %v289_v24 = vadd.f32 1.0, %v436_v23 }
 0x134   : > { %437 = vrcp.f32 %v289_v24  ;;  %v301_v28 = vand.u32 2147483648, %v289_v24  ;;  %v299_v30 = vand.u32 2147483647, %v289_v24  ;;  %vm295_vm3 = vweird.f32 %v289_v24 }
 0x136   : > { %v302_v32 = vor.u32 1.1754944e-38, %v301_v28  ;;  %vm300_vm5 = vcmp.eq.f32.partialorder %v299_v30, 8.507059e+37 }
 0x13a   : > { %v438_v25 = vpop.eup %437 }
 0x13b   : > { %v291_v26 = vmul.f32 %v438_v25, %v289_v24  ;;  %vm296_vm2 = vweird.f32 %v438_v25 }
 0x13c   : > { %vm297_vm4 = vmor %vm295_vm3, %vm296_vm2 }
 0x13d   : > { %v292_v27 = vsub.f32 1.0, %v291_v26 }
 0x13f   : > { %v293_v29 = vmul.f32 %v438_v25, %v292_v27 }
 0x141   : > { %v294_v31 = vadd.f32 %v438_v25, %v293_v29 }
 0x143   : > { %v298_v33 = vsel %vm297_vm4, %v438_v25, %v294_v31 }
 0x144   : > { %v303_v34 = vsel %vm300_vm5, %v302_v32, %v298_v33 }
 0x145   : > { %v305_v35 = vperm.slane %v303_v34, 0 }
 0x147   : > { %v306_v36 = vmul.f32 %v305_v35, %v220_v4 }
 0x149   : > { %307 = vst.msk [vmem:[%s215_s16] sm:$0xff] %vm221_vm0, %v306_v36 }
 0x14a   : > { %466 = shalt.err (!%p463_p3)
}
 0x14b   : > { %396 = dma.vmem_to_hbm [thread:$0]  (%p571_p5), %s322_s17, 128, %s324_s23, %s309_s22  }
 0x14c PF: > { %p402_p4 = scmp.ge.s32.totalorder %s501_s21, 2  ;;  %s335_s10 = sand.u32 1, %s489_s18  }
 0x14d   : > { %s336_s11 = scalar_lea.sflag [#allocation3], %s335_s10 }
 0x14e   : > { %p399_p7 = pnand %p402_p4, %p575_p6 }
 0x150   : > { %p400_p8 = pneg %p399_p7 }
 0x152   : > { %484 = dma.done.wait (%p400_p8), %s336_s11, 128  }
 0x153   : > { %486 = vsyncadd (%p400_p8), %s336_s11, 4294967168  ;;  %p15_p9 = scmp.ge.s32.totalorder %s558_s24, 4   ;;  %s653_s18 = smov %s493_s19 }
 0x154   : > { %s654_s19 = smov %s497_s20  ;;  %s655_s20 = smov %s569_s27 }
 0x155   : > { %s656_s21 = smov %s558_s24  ;;  %17 = sbr.rel (!%p15_p9) target bundleno = 3 (0x3), region = 75 }
 0x15a   :  { %342 = vsyncpa [#allocation3], 1 }
 0x15b   :  { %344 = vsyncpa [#allocation3 + $0x1], 1 }

</bundles_post_ra>
